<compile_context>
chip_gen: v7x
topology: tpu7x:2x2x1
jax: 0.10.0
libtpu: 0.0.40
codegen_flags: <defaults>
</compile_context>

<pallas_src>
import jax
import jax.numpy as jnp
from jax.experimental import pallas as pl
from jax.experimental.pallas import tpu as pltpu


def _pooled_head_kernel(hidden_ref, w_ref, wp_ref, bp_ref, wc_ref, bc_ref,
                        out_ref, acc_ref):
    """Grid = (B, nT); b axis 'parallel', t axis 'arbitrary' (reduction).

    hidden_ref : (tT, H)      time-tile of hidden_states for batch row b
    w_ref      : (tT, 1) f32  keep[b, t] / count[b] (0 for masked/padded frames)
    wp_ref     : (H,  Pp)     projector weight [in, out], lane-padded
    bp_ref     : (1,  Pp)     projector bias, lane-padded
    wc_ref     : (Pp, Lp)     classifier weight [in, out], lane-padded
    bc_ref     : (1,  Lp)     classifier bias, lane-padded
    out_ref    : (1,  Lp)     logits row for batch b, lane-padded
    acc_ref    : (1,  H) f32  running masked mean of hidden over T
    """
    t = pl.program_id(1)

    @pl.when(t == 0)
    def _init():
        acc_ref[...] = jnp.zeros_like(acc_ref)

    # Masked-mean accumulation.  Weights already include 1/count, so after the
    # last tile acc holds the masked *mean* of hidden over valid frames.
    h = hidden_ref[...].astype(jnp.float32)                 # (tT, H)
    w = w_ref[...]                                          # (tT, 1)
    acc_ref[...] += jnp.sum(h * w, axis=0, keepdims=True)   # (1, H)

    @pl.when(t == pl.num_programs(1) - 1)
    def _finalize():
        # Linearity: mean_valid(x @ Wp + bp) == mean_valid(x) @ Wp + bp, so the
        # projector runs once on the pooled row (no [B, T, P] intermediate).
        pooled = acc_ref[...]                                               # (1, H)
        proj = jnp.dot(pooled, wp_ref[...],
                       preferred_element_type=jnp.float32) + bp_ref[...]    # (1, Pp)
        logits = jnp.dot(proj, wc_ref[...],
                         preferred_element_type=jnp.float32) + bc_ref[...]  # (1, Lp)
        out_ref[...] = logits


def avhubert_classifier_head(hidden_states, attention_mask, wp, bp, wc, bc,
                             *, t_tile=256):
    """Pallas implementation of the AVHUBERTClassifier head.

    hidden_states  : [B, T, H] encoder output (f32 or bf16; accumulated in f32)
    attention_mask : [B, S] bool, True == valid (same convention the reference
                     code uses: forward_padding_mask keeps rows whose group is
                     all True before pooling).
    wp, bp : projector  nn.Linear params -- wp is [H, P] ( == torch weight.T )
    wc, bc : classifier nn.Linear params -- wc is [P, L]
    Returns logits [B, L] float32.
    """
    B, T, H = hidden_states.shape
    S = attention_mask.shape[1]
    P = wp.shape[1]
    L = wc.shape[1]

    # ---- forward_padding_mask glue (cheap + lane-sparse -> plain JAX) ----
    extra = S % T
    if extra > 0:
        attention_mask = attention_mask[:, :S - extra]
    keep = jnp.all(attention_mask.astype(bool).reshape(B, T, -1), axis=-1)   # [B, T]
    count = jnp.sum(keep.astype(jnp.float32), axis=1, keepdims=True)         # [B, 1]
    count = jnp.maximum(count, 1.0)      # guard: all-padded rows pool to 0, not NaN
    weights = (keep.astype(jnp.float32) / count)[..., None]                  # [B, T, 1]

    # ---- tile the T (reduction) axis; pad T so the tile divides it ----
    if T >= 8:
        t_tile = max(8, (min(t_tile, T) // 8) * 8)   # multiple of 8 sublanes
    else:
        t_tile = T                                   # full-dim block is always legal
    T_pad = -(-T // t_tile) * t_tile
    if T_pad != T:
        hidden_states = jnp.pad(hidden_states, ((0, 0), (0, T_pad - T), (0, 0)))
        weights = jnp.pad(weights, ((0, 0), (0, T_pad - T), (0, 0)))
    n_t = T_pad // t_tile

    # ---- lane-pad the tiny matmul dims (full-tile MXU, unmasked vst) ----
    P_pad = -(-P // 128) * 128
    L_pad = -(-L // 128) * 128
    f32 = jnp.float32
    wp_p = jnp.zeros((H, P_pad), f32).at[:, :P].set(wp.astype(f32))
    bp_p = jnp.zeros((1, P_pad), f32).at[0, :P].set(bp.astype(f32))
    wc_p = jnp.zeros((P_pad, L_pad), f32).at[:P, :L].set(wc.astype(f32))
    bc_p = jnp.zeros((1, L_pad), f32).at[0, :L].set(bc.astype(f32))

    out = pl.pallas_call(
        _pooled_head_kernel,
        out_shape=jax.ShapeDtypeStruct((B, 1, L_pad), f32),
        grid=(B, n_t),
        in_specs=[
            pl.BlockSpec((None, t_tile, H), lambda b, t: (b, t, 0)),   # hidden tile
            pl.BlockSpec((None, t_tile, 1), lambda b, t: (b, t, 0)),   # frame weights
            pl.BlockSpec((H, P_pad), lambda b, t: (0, 0)),             # projector W
            pl.BlockSpec((1, P_pad), lambda b, t: (0, 0)),             # projector b
            pl.BlockSpec((P_pad, L_pad), lambda b, t: (0, 0)),         # classifier W
            pl.BlockSpec((1, L_pad), lambda b, t: (0, 0)),             # classifier b
        ],
        out_specs=pl.BlockSpec((None, 1, L_pad), lambda b, t: (b, 0, 0)),
        scratch_shapes=[pltpu.VMEM((1, H), jnp.float32)],
        compiler_params=pltpu.CompilerParams(
            dimension_semantics=("parallel", "arbitrary")),
    )(hidden_states, weights, wp_p, bp_p, wc_p, bc_p)

    return out[:, 0, :L]


def standin_encoder(audio, video, w_enc, b_enc):
    # TODO(synk): the real encoder.extract_finetune (AV-HuBERT ResNet/conv
    # frontends + transformer stack) has no compact Pallas equivalent here; it
    # is replaced by a deterministic linear audio/video fusion -> [B, T, H].
    feats = jnp.concatenate([audio, video], axis=-1)
    return feats @ w_enc + b_enc


if __name__ == "__main__":
    B, T, H, P, L = 2, 32, 32, 16, 4    # batch, frames, hidden, proj, num_labels
    Da, Dv = 10, 12                     # synthetic audio / video feature dims
    S = 131                             # raw mask length (S % T = 3 exercises the trim)

    key = jax.random.PRNGKey(0)
    ks = jax.random.split(key, 8)

    audio = jax.random.normal(ks[0], (B, T, Da), jnp.float32)
    video = jax.random.normal(ks[1], (B, T, Dv), jnp.float32)
    padding_mask = jax.random.bernoulli(ks[2], 0.8, (B, S))
    G = (S - S % T) // T
    # guarantee at least one fully-valid group per row (pooling divisor nonzero)
    padding_mask = padding_mask.at[:, :G].set(True)

    w_enc = 0.05 * jax.random.normal(ks[3], (Da + Dv, H), jnp.float32)
    b_enc = jnp.zeros((H,), jnp.float32)
    wp = 0.05 * jax.random.normal(ks[4], (H, P), jnp.float32)   # projector [in, out]
    bp = 0.01 * jnp.ones((P,), jnp.float32)
    wc = 0.05 * jax.random.normal(ks[5], (P, L), jnp.float32)   # classifier [in, out]
    bc = jnp.zeros((L,), jnp.float32)

    hidden_states = standin_encoder(audio, video, w_enc, b_enc)   # outputs[0]

    logits = avhubert_classifier_head(hidden_states, padding_mask, wp, bp, wc, bc,
                                      t_tile=8)   # 4 reduction steps over T in the demo
    logits = jax.block_until_ready(logits)

    # ---- plain-JAX reference following the PyTorch op order exactly ----
    extra = S % T
    am = padding_mask[:, :S - extra] if extra else padding_mask
    keep = jnp.all(am.reshape(B, T, -1), axis=-1)
    proj_ref = hidden_states @ wp + bp
    proj_ref = jnp.where(keep[:, :, None], proj_ref, 0.0)
    pooled_ref = proj_ref.sum(axis=1) / keep.sum(axis=1, keepdims=True)
    logits_ref = pooled_ref @ wc + bc

    assert logits.shape == (B, L) and logits.dtype == jnp.float32
    assert bool(jnp.all(jnp.isfinite(logits)))
    assert bool(jnp.allclose(logits, logits_ref, atol=1e-5, rtol=1e-5))
    print("KERNEL_OK")
</pallas_src>

<mosaic_0001>
module attributes {stable_mosaic.version = 11 : i64} {
  func.func @_pooled_head_kernel(%arg0: i32, %arg1: i32, %arg2: memref<1x8x32xf32, #tpu.memory_space<vmem>>, %arg3: memref<1x8x1xf32, #tpu.memory_space<vmem>>, %arg4: memref<32x128xf32, #tpu.memory_space<vmem>>, %arg5: memref<1x128xf32, #tpu.memory_space<vmem>>, %arg6: memref<128x128xf32, #tpu.memory_space<vmem>>, %arg7: memref<1x128xf32, #tpu.memory_space<vmem>>, %arg8: memref<1x1x128xf32, #tpu.memory_space<vmem>>, %arg9: memref<1x32xf32, #tpu.memory_space<vmem>>) attributes {dimension_semantics = [#tpu.dimension_semantics<parallel>, #tpu.dimension_semantics<arbitrary>], iteration_bounds = array<i64: 2, 4>, scalar_prefetch = 0 : i64, scratch_operands = 1 : i64, tpu.core_type = #tpu.core_type<tc>, window_params = [{transform_indices = @transform_0, window_bounds = array<i64: 1, 8, 32>}, {transform_indices = @transform_1, window_bounds = array<i64: 1, 8, 1>}, {pipeline_mode = #tpu.pipeline_mode<synchronous>, transform_indices = @transform_2, window_bounds = array<i64: 32, 128>}, {pipeline_mode = #tpu.pipeline_mode<synchronous>, transform_indices = @transform_3, window_bounds = array<i64: 1, 128>}, {pipeline_mode = #tpu.pipeline_mode<synchronous>, transform_indices = @transform_4, window_bounds = array<i64: 128, 128>}, {pipeline_mode = #tpu.pipeline_mode<synchronous>, transform_indices = @transform_5, window_bounds = array<i64: 1, 128>}, {transform_indices = @transform_6, window_bounds = array<i64: 1, 1, 128>}]} {
    %c0_i32 = arith.constant 0 : i32
    %0 = arith.cmpi eq, %arg1, %c0_i32 : i32
    %1 = arith.extui %0 : i1 to i32
    %c0_i32_0 = arith.constant 0 : i32
    %2 = arith.cmpi ne, %1, %c0_i32_0 : i32
    scf.if %2 {
      %cst_11 = arith.constant 0.000000e+00 : f32
      %17 = vector.broadcast %cst_11 : f32 to vector<1x32xf32>
      %c0_12 = arith.constant 0 : index
      %c0_13 = arith.constant 0 : index
      %18 = vector.load %arg9[%c0_12, %c0_13] : memref<1x32xf32, #tpu.memory_space<vmem>>, vector<1x32xf32>
      tpu.vector_store %arg9[%c0_12, %c0_13], %17 {strides = array<i32>} : memref<1x32xf32, #tpu.memory_space<vmem>>, vector<1x32xf32>,
    } else {
    }
    %c0 = arith.constant 0 : index
    %c0_1 = arith.constant 0 : index
    %c0_2 = arith.constant 0 : index
    %3 = vector.load %arg2[%c0, %c0_1, %c0_2] : memref<1x8x32xf32, #tpu.memory_space<vmem>>, vector<1x8x32xf32>
    %4 = vector.shape_cast %3 : vector<1x8x32xf32> to vector<8x32xf32>
    %c0_3 = arith.constant 0 : index
    %c0_4 = arith.constant 0 : index
    %c0_5 = arith.constant 0 : index
    %5 = vector.load %arg3[%c0_3, %c0_4, %c0_5] : memref<1x8x1xf32, #tpu.memory_space<vmem>>, vector<1x8x1xf32>
    %6 = vector.shape_cast %5 : vector<1x8x1xf32> to vector<8x1xf32>
    %c0_6 = arith.constant 0 : index
    %c0_7 = arith.constant 0 : index
    %7 = vector.load %arg9[%c0_6, %c0_7] : memref<1x32xf32, #tpu.memory_space<vmem>>, vector<1x32xf32>
    %8 = vector.broadcast %6 : vector<8x1xf32> to vector<8x32xf32>
    %9 = arith.mulf %4, %8 : vector<8x32xf32>
    %cst = arith.constant dense<0.000000e+00> : vector<32xf32>
    %10 = vector.multi_reduction <add>, %9, %cst [0] : vector<8x32xf32> to vector<32xf32>
    %11 = vector.shape_cast %10 : vector<32xf32> to vector<1x32xf32>
    %12 = arith.addf %7, %11 : vector<1x32xf32>
    %c0_8 = arith.constant 0 : index
    %c0_9 = arith.constant 0 : index
    %13 = vector.load %arg9[%c0_8, %c0_9] : memref<1x32xf32, #tpu.memory_space<vmem>>, vector<1x32xf32>
    tpu.vector_store %arg9[%c0_8, %c0_9], %12 {strides = array<i32>} : memref<1x32xf32, #tpu.memory_space<vmem>>, vector<1x32xf32>,
    %c3_i32 = arith.constant 3 : i32
    %14 = arith.cmpi eq, %arg1, %c3_i32 : i32
    %15 = arith.extui %14 : i1 to i32
    %c0_i32_10 = arith.constant 0 : i32
    %16 = arith.cmpi ne, %15, %c0_i32_10 : i32
    scf.if %16 {
      %c0_11 = arith.constant 0 : index
      %c0_12 = arith.constant 0 : index
      %17 = vector.load %arg9[%c0_11, %c0_12] : memref<1x32xf32, #tpu.memory_space<vmem>>, vector<1x32xf32>
      %c0_13 = arith.constant 0 : index
      %c0_14 = arith.constant 0 : index
      %18 = vector.load %arg4[%c0_13, %c0_14] : memref<32x128xf32, #tpu.memory_space<vmem>>, vector<32x128xf32>
      %cst_15 = arith.constant dense<0.000000e+00> : vector<1x128xf32>
      %19 = tpu.matmul %17, %18, %cst_15 {dimension_numbers = #tpu.dot_dimension_numbers<[1], [0], [0], [1], [0, 0, 1, 1], [], []>} : vector<1x32xf32>, vector<32x128xf32>, vector<1x128xf32> -> vector<1x128xf32>
      %c0_16 = arith.constant 0 : index
      %c0_17 = arith.constant 0 : index
      %20 = vector.load %arg5[%c0_16, %c0_17] : memref<1x128xf32, #tpu.memory_space<vmem>>, vector<1x128xf32>
      %21 = arith.addf %19, %20 : vector<1x128xf32>
      %c0_18 = arith.constant 0 : index
      %c0_19 = arith.constant 0 : index
      %22 = vector.load %arg6[%c0_18, %c0_19] : memref<128x128xf32, #tpu.memory_space<vmem>>, vector<128x128xf32>
      %cst_20 = arith.constant dense<0.000000e+00> : vector<1x128xf32>
      %23 = tpu.matmul %21, %22, %cst_20 {dimension_numbers = #tpu.dot_dimension_numbers<[1], [0], [0], [1], [0, 0, 1, 1], [], []>} : vector<1x128xf32>, vector<128x128xf32>, vector<1x128xf32> -> vector<1x128xf32>
      %c0_21 = arith.constant 0 : index
      %c0_22 = arith.constant 0 : index
      %24 = vector.load %arg7[%c0_21, %c0_22] : memref<1x128xf32, #tpu.memory_space<vmem>>, vector<1x128xf32>
      %25 = arith.addf %23, %24 : vector<1x128xf32>
      %c0_23 = arith.constant 0 : index
      %c0_24 = arith.constant 0 : index
      %c0_25 = arith.constant 0 : index
      %26 = vector.load %arg8[%c0_23, %c0_24, %c0_25] : memref<1x1x128xf32, #tpu.memory_space<vmem>>, vector<1x1x128xf32>
      %27 = vector.shape_cast %26 : vector<1x1x128xf32> to vector<1x128xf32>
      %28 = vector.shape_cast %25 : vector<1x128xf32> to vector<1x1x128xf32>
      tpu.vector_store %arg8[%c0_23, %c0_24, %c0_25], %28 {strides = array<i32>} : memref<1x1x128xf32, #tpu.memory_space<vmem>>, vector<1x1x128xf32>,
    } else {
    }
    return
  }
  func.func @transform_0(%arg0: i32, %arg1: i32) -> (i32, i32, i32) {
    %c0_i32 = arith.constant 0 : i32
    %c0_i32_0 = arith.constant 0 : i32
    return %arg0, %arg1, %c0_i32 : i32, i32, i32
  }
  func.func @transform_1(%arg0: i32, %arg1: i32) -> (i32, i32, i32) {
    %c0_i32 = arith.constant 0 : i32
    %c0_i32_0 = arith.constant 0 : i32
    return %arg0, %arg1, %c0_i32 : i32, i32, i32
  }
  func.func @transform_2(%arg0: i32, %arg1: i32) -> (i32, i32) {
    %c0_i32 = arith.constant 0 : i32
    %c0_i32_0 = arith.constant 0 : i32
    %c0_i32_1 = arith.constant 0 : i32
    return %c0_i32, %c0_i32_0 : i32, i32
  }
  func.func @transform_3(%arg0: i32, %arg1: i32) -> (i32, i32) {
    %c0_i32 = arith.constant 0 : i32
    %c0_i32_0 = arith.constant 0 : i32
    %c0_i32_1 = arith.constant 0 : i32
    return %c0_i32, %c0_i32_0 : i32, i32
  }
  func.func @transform_4(%arg0: i32, %arg1: i32) -> (i32, i32) {
    %c0_i32 = arith.constant 0 : i32
    %c0_i32_0 = arith.constant 0 : i32
    %c0_i32_1 = arith.constant 0 : i32
    return %c0_i32, %c0_i32_0 : i32, i32
  }
  func.func @transform_5(%arg0: i32, %arg1: i32) -> (i32, i32) {
    %c0_i32 = arith.constant 0 : i32
    %c0_i32_0 = arith.constant 0 : i32
    %c0_i32_1 = arith.constant 0 : i32
    return %c0_i32, %c0_i32_0 : i32, i32
  }
  func.func @transform_6(%arg0: i32, %arg1: i32) -> (i32, i32, i32) {
    %c0_i32 = arith.constant 0 : i32
    %c0_i32_0 = arith.constant 0 : i32
    %c0_i32_1 = arith.constant 0 : i32
    return %arg0, %c0_i32, %c0_i32_0 : i32, i32, i32
  }
}

</mosaic_0001>

<bundles_post_ra>
// kernel: tpu_custom_call.1
= control target key start
LH: loop header
LB: loop body
LE: loop exit
PB: predicated region body
PF: predicated region fallthrough
CT: control target
= control target key end

     0   :  { %11 = vsyncpa [#allocation4], 0  ;;  %s1294_s0 = inlined_call_operand.vmem [shape: f32[2,32,32], index: 0, kind: input, shape index: {}]   ;;  %s1295_s1 = inlined_call_operand.vmem [shape: f32[2,32,1], index: 1, kind: input, shape index: {}]   ;;  %s1296_s2 = inlined_call_operand.hbm [shape: f32[32,128], index: 2, kind: input, shape index: {}]   ;;  %s1297_s3 = inlined_call_operand.vmem [shape: f32[1,128], index: 3, kind: input, shape index: {}]   ;;  %s1298_s4 = inlined_call_operand.hbm [shape: f32[128,128], index: 4, kind: input, shape index: {}]   ;;  %s1299_s5 = inlined_call_operand.vmem [shape: f32[1,128], index: 5, kind: input, shape index: {}]   ;;  %s1300_s6 = inlined_call_operand.hbm [shape: f32[2,1,128], index: 6, kind: output, shape index: {}]  }
   0x1   :  { %12 = vsyncpa [#allocation7], 0 }
   0x2   :  { %13 = vsyncpa [#allocation5], 0 }
   0x3   :  { %15 = vsyncpa [#allocation5 + $0x1], 0  ;;  %s1077_s21 = smov 0   ;;  %s1079_s22 = smov 0  }
   0x4   :  { %s1081_s23 = smov 0   ;;  %s1083_s24 = smov 0  }
   0x5   :  { %s1085_s25 = smov 0   ;;  %s1087_s26 = smov 0  }
   0x6   :  { %s1089_s27 = smov 0   ;;  %s1091_s28 = smov 0  }
   0x7 LB: > { %1309 = sst [smem:[#allocation12_spill]] %s1010_s23  ;;  %s655_s29 = sadd.s32 4294967295, %s1030_s28   ;;  %s1030_s28 = sphi %s1091_s28, %s21_s28   ;;  %s1026_s27 = sphi %s1089_s27, %s1329_s27   ;;  %s1022_s26 = sphi %s1087_s26, %s1332_s26   ;;  %s1018_s25 = sphi %s1085_s25, %s1327_s25   ;;  %s1014_s24 = sphi %s1083_s24, %s1326_s24   ;;  %s1010_s23 = sphi %s1081_s23, %s1325_s23   ;;  %s1006_s22 = sphi %s1079_s22, %s1331_s22   ;;  %s1002_s21 = sphi %s1077_s21, %s1330_s21  }
   0x8   : > { %1310 = sst [smem:[#allocation13_spill]] %s1022_s26  ;;  %s656_s30 = sadd.s32 4294967294, %s1030_s28  }
   0x9   : > { %1311 = sst [smem:[#allocation14_spill]] %s1026_s27  ;;  %s30_s7 = sadd.s32 1, %s1022_s26 }
   0xa   : > { %s33_s8 = sadd.s32 1, %s1026_s27  ;;  %p31_p0 = scmp.ge.s32.totalorder %s30_s7, 4 }
   0xb   : > { %s180_s9 = sadd.s32 1, %s1010_s23  ;;  %p190_p1 = scmp.ne.s32.totalorder %s1010_s23, %s1006_s22 }
   0xc   : > { %p191_p2 = scmp.eq.s32.totalorder %s655_s29, 7  ;;  %s1334_s7 = smov (%p31_p0, %s30_s7), 0 }
   0xd   : > { %1312 = sst [smem:[#allocation15_spill]] %s1334_s7  ;;  %s1336_s8 = smov (!%p31_p0, %s33_s8), %s1026_s27 }
   0xe   : > { %p1127_p3 = por %p191_p2, %p190_p1  ;;  %p196_p4 = scmp.ne.s32.totalorder %s1006_s22, %s1002_s21 }
   0xf   : > { %p35_p5 = scmp.ge.s32.totalorder %s1336_s8, 2  ;;  %p197_p6 = scmp.eq.s32.totalorder %s656_s30, 7 }
  0x10   : > { %s1313_s10 = scalar_select %p1127_p3, 1, 0 }
  0x11   : > { %p657_p7 = scmp.ge.s32.totalorder %s1030_s28, 1  ;;  %p204_p8 = scmp.lt.s32.totalorder %s1030_s28, 9 }
  0x12   : > { %s1338_s8 = smov (%p35_p5, %s1336_s8), 0  ;;  %p1137_p9 = por %p197_p6, %p196_p4 }
  0x13   : > { %1314 = sst [smem:[#allocation16_spill]] %s1338_s8  ;;  %p1141_p10 = pnand %p657_p7, %p204_p8 }
  0x14   : > { %s1315_s11 = scalar_select %p1137_p9, 1, 0 }
  0x15   : > { %s1316_s12 = scalar_select %p1141_p10, 1, 0 }
  0x16   : > { %s177_s13 = ssub.s32 %s1026_s27, %s1338_s8  ;;  %p782_p12 = pneg %p1141_p10 }
  0x17   : > { %p178_p11 = scmp.eq.s32.totalorder %s177_s13, 0  ;;  %p1149_p13 = scmp.eq.s32.totalorder %s655_s29, 0 }
  0x18   : > { %s1032_s16 = smov [#allocation3]   ;;  %s872_s29 = scalar_lea.hbm %s1296_s2, 512 }
  0x19   : > { %s1317_s14 = scalar_select %p1149_p13, 1, 0 }
  0x1a   : > { %s1154_s15 = scalar_select %p178_p11, %s1010_s23, %s180_s9  }
  0x1b   : > { %s216_s17 = sshll.u32 %s1032_s16, 4  ;;  %p1158_p0 = pnand %p1149_p13, %p782_p12  ;;  %s217_s17 = int_to_ptr.vmem [resolvable:$true] %s216_s17 }
  0x1c   : > { %1318 = sst [smem:[#allocation17_spill]] %s1154_s15  ;;  %p873_p1 = scmp.ne.s32.totalorder %s1296_s2, %s872_s29 }
  0x1d   : > { %p874_p2 = pneg %p1158_p0  ;;  %p879_p6 = scmp.lt.u32.totalorder %s872_s29, %s1296_s2 }
  0x1f   : > { %p875_p4 = pnand %p874_p2, %p873_p1 }
  0x21   : > { %p876_p5 = pneg %p875_p4 }
  0x23   : > { %p881_p7 = pnand %p879_p6, %p876_p5 }
  0x25   : > { %884 = shalt.err (!%p881_p7)
}
  0x26   : > { %s885_s8 = scalar_lea.vmem %s217_s17, 512  ;;  %p893_p9 = scmp.lt.s32.totalorder %s217_s17, %s217_s17 }
  0x27   : > { %p886_p8 = scmp.ne.s32.totalorder %s217_s17, %s885_s8  ;;  %p894_p3 = scmp.lt.s32.totalorder %s885_s8, %s885_s8 }
  0x29   : > { %p888_p11 = pnand %p886_p8, %p874_p2  ;;  %p895_p13 = por %p894_p3, %p893_p9 }
  0x2b   : > { %p889_p12 = pneg %p888_p11 }
  0x2d   : > { %p896_p10 = pnand %p895_p13, %p889_p12 }
  0x2f   : > { %899 = shalt.err (!%p896_p10)
}
  0x30   : > { %s1033_s19 = smov 128   ;;  %s1034_s20 = smov 8  }
  0x31   : > { %785 = dma.hbm_to_vmem [thread:$0]  (!%p1158_p0), %s1296_s2, 512, %s217_s17, [#allocation4], %s1033_s19, %s1033_s19, %s1034_s20  }
  0x32   : > { %s1035_s13 = smov [#allocation6]   ;;  %s900_s27 = scalar_lea.hbm %s1298_s4, 2048 }
  0x33   : > { %s232_s9 = sshll.u32 %s1035_s13, 4  ;;  %p901_p3 = scmp.ne.s32.totalorder %s1298_s4, %s900_s27  ;;  %s233_s9 = int_to_ptr.vmem [resolvable:$true] %s232_s9 }
  0x34   : > { %p907_p13 = scmp.lt.u32.totalorder %s900_s27, %s1298_s4 }
  0x35   : > { %p903_p9 = pnand %p901_p3, %p874_p2 }
  0x37   : > { %p904_p10 = pneg %p903_p9 }
  0x39   : > { %p909_p1 = pnand %p907_p13, %p904_p10 }
  0x3b   : > { %912 = shalt.err (!%p909_p1)
}
  0x3c   : > { %s913_s17 = scalar_lea.vmem %s233_s9, 2048  ;;  %p921_p7 = scmp.lt.s32.totalorder %s233_s9, %s233_s9 }
  0x3d   : > { %p914_p4 = scmp.ne.s32.totalorder %s233_s9, %s913_s17  ;;  %p922_p8 = scmp.lt.s32.totalorder %s913_s17, %s913_s17 }
  0x3f   : > { %p916_p5 = pnand %p914_p4, %p874_p2  ;;  %p923_p11 = por %p922_p8, %p921_p7 }
  0x41   : > { %p917_p6 = pneg %p916_p5 }
  0x43   : > { %p924_p12 = pnand %p923_p11, %p917_p6 }
  0x45   : > { %927 = shalt.err (!%p924_p12)
}
  0x46   : > { %788 = dma.hbm_to_vmem [thread:$0]  (!%p1158_p0), %s1298_s4, 2048, %s233_s9, [#allocation7], %s1033_s19, %s1033_s19, %s1034_s20  }
  0x47   : > { %p1320_p3 = scmp.ne.s32.totalorder %s1316_s12, 0 }
  0x48   : > { %p1321_p9 = scmp.ne.s32.totalorder (!%p1320_p3), %s1317_s14, 0 }
  0x49   : > { %273 = sbr.rel (%p1320_p3) target bundleno = 705 (0x2c1), region = 44 }
  0x50   : > { %989 = dma.done.wait (%p1321_p9), [#allocation4], 512  }
  0x51   : > { %991 = vsyncadd (%p1321_p9), [#allocation4], 4294966784 }
  0x52   : > { %993 = dma.done.wait (%p1321_p9), [#allocation7], 2048  }
  0x53   : > { %995 = vsyncadd (%p1321_p9), [#allocation7], 4294965248  ;;  %s315_s23 = sand.u32 1, %s1006_s22   ;;  %p317_p0 = scmp.lt.s32.totalorder %s1018_s25, 1 }
  0x54   : > { %p319_p2 = scmp.lt.s32.totalorder %s1014_s24, 3  ;;  %s1227_s16 = scalar_lea.vmem [#allocation8], %s315_s23 }
  0x55   : > { %s318_s27 = scalar_select %p317_p0, %s1018_s25, 1 }
  0x56   : > { %s320_s12 = scalar_select %p319_p2, %s1014_s24, 3 }
  0x57   : > { %s664_s15 = sshll.u32 %s318_s27, 2  ;;  %p668_p10 = scmp.ne.s32.totalorder %s1014_s24, 0 }
  0x58   : > { %s322_s18 = sadd.s32 %s664_s15, %s320_s12  ;;  %vm337_vm0 = vcmask (!%p668_p10), 253952   ;;  %v1036_v0 = vmov (!%p668_p10), 0.0  }
  0x59   : > { %s665_s19 = sshll.u32 %s322_s18, 3  ;;  %336 = sbr.rel (%p668_p10) target bundleno = 96 (0x60), region = 56  ;;  %338 = vst.msk [vmem:[#allocation2] sm:$0x1] (!%p668_p10), %vm337_vm0, %v1036_v0 }
  0x5a   : > { %s324_s30 = scalar_lea.vmem %s1294_s0, %s665_s19  ;;  %s332_s9 = scalar_lea.vmem %s1295_s1, %s665_s19 }
  0x60 PF: > { %v340_v1 = vld [vmem:[%s332_s9] sm:$0xff]  ;;  %v1037_v2 = vmov 0   ;;  %vm348_vm1 = vcmask 261120   ;;  %vm357_vm2 = vcmask 253952   ;;  %p669_p13 = scmp.ne.s32.totalorder %s1014_s24, 3 }
  0x61   : > { %871 = vset.pattern.permute.xlu0 %v1037_v2  ;;  %v339_v3 = vld [vmem:[%s324_s30] sm:$0xff]  ;;  %v365_v16 = vld [vmem:[#allocation3 + $0x8] sm:$0xff] (!%p669_p13)  ;;  %v366_v17 = vld [vmem:[#allocation3 + $0x10] sm:$0xff] (!%p669_p13)  ;;  %v1038_v18 = vmov (!%p669_p13), 0.0|0.0   ;;  %vm1039_vm3 = vmmov (!%p669_p13), 0   ;;  %v1040_v21 = vmov (!%p669_p13), 0.0  }
  0x62   : > { %344 = vperm.xlu0 %871, %v340_v1   ;;  %v341_v12 = vld [vmem:[#allocation2] sm:$0x1]  ;;  %v364_v15 = vld [vmem:[#allocation3] sm:$0xff] (!%p669_p13)  ;;  %742 = vmatprep.subr.bf16.mxu0 (!%p669_p13), %v1038_v18  ;;  %v443_v23 = vld [vmem:[#allocation6 + $0x8] sm:$0xff] (!%p669_p13) }
  0x63   : > { %v743_v19 = vpack.c.bf16 (!%p669_p13), %v365_v16, %v364_v15  ;;  %v367_v20 = vld [vmem:[#allocation3 + $0x18] sm:$0xff] (!%p669_p13)  ;;  %704 = vmatprep.mubr.msk.f32.mxu0 (!%p669_p13), %vm1039_vm3, %v1040_v21  ;;  %v442_v22 = vld [vmem:[#allocation6] sm:$0xff] (!%p669_p13)  ;;  %748 = vmatprep.subr.bf16.mxu1 (!%p669_p13), %v1038_v18  ;;  %v444_v24 = vld [vmem:[#allocation6 + $0x10] sm:$0xff] (!%p669_p13) }
  0x64   : > { %v445_v25 = vld [vmem:[#allocation6 + $0x18] sm:$0xff] (!%p669_p13)  ;;  %739 = vmatprep.mubr.msk.f32.mxu1 (!%p669_p13), %vm1039_vm3, %v1040_v21  ;;  %v746_v26 = vpack.c.bf16 (!%p669_p13), %v367_v20, %v366_v17  ;;  %v749_v27 = vpack.c.bf16 (!%p669_p13), %v443_v23, %v442_v22  ;;  %v446_v29 = vld [vmem:[#allocation6 + $0x20] sm:$0xff] (!%p669_p13)  ;;  %v447_v30 = vld [vmem:[#allocation6 + $0x28] sm:$0xff] (!%p669_p13) }
  0x65   : > { %744 = vmatpush3.bf16.msra.mxu0 (!%p669_p13), %v743_v19  ;;  %v752_v28 = vpack.c.bf16 (!%p669_p13), %v445_v25, %v444_v24  ;;  %v755_v32 = vpack.c.bf16 (!%p669_p13), %v447_v30, %v446_v29  ;;  %v448_v33 = vld [vmem:[#allocation6 + $0x30] sm:$0xff] (!%p669_p13)  ;;  %v449_v34 = vld [vmem:[#allocation6 + $0x38] sm:$0xff] (!%p669_p13)  ;;  %v450_v36 = vld [vmem:[#allocation6 + $0x40] sm:$0xff] (!%p669_p13) }
  0x66   : > { %745 = vmatprep.subr.bf16.mxu0 (!%p669_p13), %v1038_v18  ;;  %750 = vmatpush3.bf16.msra.mxu1 (!%p669_p13), %v749_v27  ;;  %v758_v35 = vpack.c.bf16 (!%p669_p13), %v449_v34, %v448_v33  ;;  %v451_v37 = vld [vmem:[#allocation6 + $0x48] sm:$0xff] (!%p669_p13)  ;;  %v452_v39 = vld [vmem:[#allocation6 + $0x50] sm:$0xff] (!%p669_p13)  ;;  %v453_v40 = vld [vmem:[#allocation6 + $0x58] sm:$0xff] (!%p669_p13) }
  0x67   : > { %751 = vmatprep.subr.bf16.mxu1 (!%p669_p13), %v1038_v18  ;;  %v761_v38 = vpack.c.bf16 (!%p669_p13), %v451_v37, %v450_v36  ;;  %v764_v41 = vpack.c.bf16 (!%p669_p13), %v453_v40, %v452_v39  ;;  %v454_v42 = vld [vmem:[#allocation6 + $0x60] sm:$0xff] (!%p669_p13)  ;;  %v455_v43 = vld [vmem:[#allocation6 + $0x68] sm:$0xff] (!%p669_p13)  ;;  %v456_v45 = vld [vmem:[#allocation6 + $0x70] sm:$0xff] (!%p669_p13) }
  0x68   : > { %v767_v44 = vpack.c.bf16 (!%p669_p13), %v455_v43, %v454_v42  ;;  %v457_v46 = vld [vmem:[#allocation6 + $0x78] sm:$0xff] (!%p669_p13) }
  0x69   : > { %747 = vmatpush3.bf16.msra.mxu0 (!%p669_p13), %v746_v26  ;;  %v770_v47 = vpack.c.bf16 (!%p669_p13), %v457_v46, %v456_v45  ;;  %v368_v48 = vld [vmem:[%s1297_s3] sm:$0x1] (!%p669_p13) }
  0x6a   : > { %753 = vmatpush3.bf16.msra.mxu1 (!%p669_p13), %v752_v28  ;;  %v458_v52 = vld [vmem:[%s1299_s5] sm:$0x1] (!%p669_p13) }
  0x6b   : > { %754 = vmatprep.subr.bf16.mxu1 (!%p669_p13), %v1038_v18 }
  0x6e   : > { %756 = vmatpush3.bf16.msra.mxu1 (!%p669_p13), %v755_v32 }
  0x6f   : > { %757 = vmatprep.subr.bf16.mxu1 (!%p669_p13), %v1038_v18 }
  0x72   : > { %759 = vmatpush3.bf16.msra.mxu1 (!%p669_p13), %v758_v35 }
  0x73   : > { %760 = vmatprep.subr.bf16.mxu1 (!%p669_p13), %v1038_v18 }
  0x76   : > { %762 = vmatpush3.bf16.msra.mxu1 (!%p669_p13), %v761_v38 }
  0x77   : > { %763 = vmatprep.subr.bf16.mxu1 (!%p669_p13), %v1038_v18 }
  0x7a   : > { %765 = vmatpush3.bf16.msra.mxu1 (!%p669_p13), %v764_v41 }
  0x7b   : > { %766 = vmatprep.subr.bf16.mxu1 (!%p669_p13), %v1038_v18 }
  0x7e   : > { %768 = vmatpush3.bf16.msra.mxu1 (!%p669_p13), %v767_v44 }
  0x7f   : > { %769 = vmatprep.subr.bf16.mxu1 (!%p669_p13), %v1038_v18 }
  0x82   : > { %771 = vmatpush3.bf16.msra.mxu1 (!%p669_p13), %v770_v47 }
  0xe1   : > { %v345_v4 = vpop.permute.xlu0 %344 }
  0xe2   : > { %v347_v5 = vmul.f32 %v345_v4, %v339_v3 }
  0xe4   : > { %v349_v6 = vsel %vm348_vm1, %v347_v5, 0.0 }
  0xe5   : > { %v350_v7 = vrot.slane %v349_v6, 4 }
  0xe7   : > { %v351_v8 = vadd.f32 %v350_v7, %v349_v6 }
  0xe9   : > { %v352_v9 = vrot.slane %v351_v8, 2 }
  0xeb   : > { %v353_v10 = vadd.f32 %v352_v9, %v351_v8 }
  0xed   : > { %v354_v11 = vrot.slane %v353_v10, 1  ;;  %362 = sbr.rel (%p669_p13) target bundleno = 680 (0x2a8), region = 60 }
  0xef   : > { %v355_v13 = vadd.f32 %v354_v11, %v353_v10 }
  0xf1   : > { %v356_v14 = vadd.f32 %v355_v13, %v341_v12 }
  0xf3   : > { %358 = vst.msk [vmem:[#allocation2] sm:$0x1] %vm357_vm2, %v356_v14 }
  0xfa   : > { %v363_v31 = vld [vmem:[#allocation2] sm:$0x1] }
  0xfb   : > { %705 = vmatmul.mubr.msk.f32.vlgmr.msra.gmra.mrb[0].mxu0 %vm348_vm1, %v363_v31 }
 0x1ce   : > { %v438_v49 = vpop.f32.mrb[0].mxu0 }
 0x1cf   : > { %v439_v50 = vadd.f32 %v438_v49, %v368_v48  ;;  %v706_v51 = vpop.f32.mrb[1].mxu0 }
 0x1d1   : > { %740 = vmatmul.mubr.f32.vlgmr.msra.gmra.mrb[0].mxu1 %v439_v50 }
 0x2a4   : > { %v525_v53 = vpop.f32.mrb[0].mxu1 }
 0x2a5   : > { %v526_v54 = vadd.f32 %v525_v53, %v458_v52  ;;  %v741_v55 = vpop.f32.mrb[1].mxu1 }
 0x2a7   : > { %529 = vst [vmem:[%s1227_s16] sm:$0x1] %v526_v54 }
 0x2a8 PF: > { %s671_s7 = sshll.u32 %s1018_s25, 4  ;;  %s543_s18 = sshll.u32 %s1227_s16, 4  ;;  %s544_s18 = int_to_ptr.vmem [resolvable:$true] %s543_s18 }
 0x2a9   : > { %s1244_s15 = scalar_lea.hbm %s1300_s6, %s671_s7  ;;  %s531_s19 = scalar_lea.sflag [#allocation5], %s315_s23 }
 0x2aa   : > { %s928_s20 = scalar_lea.vmem %s544_s18, 16  ;;  %p1322_p4 = scmp.ne.s32.totalorder %s1313_s10, 0 }
 0x2ab   : > { %p929_p1 = scmp.ne.s32.totalorder %s544_s18, %s928_s20  ;;  %s1041_s29 = smov [#allocation8]  }
 0x2ac   : > { %s932_s30 = sshll.u32 %s1041_s29, 4  ;;  %s933_s30 = int_to_ptr.vmem [resolvable:$false] %s932_s30 }
 0x2ad   : > { %p930_p5 = pnand %p929_p1, %p1322_p4  ;;  %s934_s14 = scalar_lea.vmem %s933_s30, 32 }
 0x2ae   : > { %p935_p7 = scmp.lt.s32.totalorder %s544_s18, %s933_s30  ;;  %p936_p8 = scmp.lt.s32.totalorder %s934_s14, %s928_s20 }
 0x2af   : > { %p931_p6 = pneg %p930_p5 }
 0x2b0   : > { %p937_p11 = por %p936_p8, %p935_p7 }
 0x2b2   : > { %p938_p12 = pnand %p937_p11, %p931_p6 }
 0x2b4   : > { %941 = shalt.err (!%p938_p12)
}
 0x2b5   : > { %s942_s25 = scalar_lea.hbm %s1244_s15, 16  ;;  %s946_s9 = scalar_lea.hbm %s1300_s6, 32 }
 0x2b6   : > { %p943_p3 = scmp.ne.s32.totalorder %s1244_s15, %s942_s25  ;;  %p947_p2 = scmp.lt.u32.totalorder %s1244_s15, %s1300_s6 }
 0x2b7   : > { %p948_p10 = scmp.lt.u32.totalorder %s946_s9, %s942_s25  ;;  %p950_p1 = scmp.lt.u32.totalorder %s942_s25, %s1244_s15 }
 0x2b8   : > { %p944_p9 = pnand %p943_p3, %p1322_p4 }
 0x2b9   : > { %p949_p13 = por %p948_p10, %p947_p2 }
 0x2ba   : > { %p945_p0 = pneg %p944_p9 }
 0x2bb   : > { %p951_p5 = por %p950_p1, %p949_p13 }
 0x2bd   : > { %p952_p6 = pnand %p951_p5, %p945_p0 }
 0x2bf   : > { %955 = shalt.err (!%p952_p6)
}
 0x2c0   : > { %780 = dma.vmem_to_hbm [thread:$0]  (%p1322_p4), %s544_s18, 16, %s1244_s15, %s531_s19  }
 0x2c1 PF: > { %p797_p7 = scmp.ge.s32.totalorder %s1030_s28, 2  ;;  %s555_s8 = sand.u32 1, %s1002_s21  }
 0x2c2   : > { %p1323_p8 = scmp.ne.s32.totalorder %s1315_s11, 0  ;;  %s556_s17 = scalar_lea.sflag [#allocation5], %s555_s8 }
 0x2c4   : > { %p790_p11 = pnand %p797_p7, %p1323_p8 }
 0x2c6   : > { %997 = dma.done.wait (!%p790_p11), %s556_s17, 16  }
 0x2c7   : > { %999 = vsyncadd (!%p790_p11), %s556_s17, 4294967280  ;;  %s21_s28 = sadd.s32 1, %s1030_s28   ;;  %s1324_s26 = sld [smem:[#allocation12_spill]] }
 0x2c8   : > { %p18_p12 = scmp.ge.s32.totalorder %s21_s28, 10   ;;  %s1325_s23 = sld [smem:[#allocation17_spill]] }
 0x2c9   : > { %s1326_s24 = sld [smem:[#allocation13_spill]]  ;;  %s1327_s25 = sld [smem:[#allocation14_spill]] }
 0x2ca   : > { %s1328_s10 = sld [smem:[#allocation15_spill]]  ;;  %s1329_s27 = sld [smem:[#allocation16_spill]] }
 0x2cb   : > { %s1330_s21 = smov %s1006_s22  ;;  %20 = sbr.rel (!%p18_p12) target bundleno = 7 (0x7), region = 99 }
 0x2cd   : > { %s1331_s22 = smov %s1324_s26 }
 0x2d0   : > { %s1332_s26 = smov %s1328_s10 }
 0x2d2   :  { %560 = vsyncpa [#allocation4], 1 }
 0x2d3   :  { %562 = vsyncpa [#allocation4 + $0x1], 1 }
 0x2d4   :  { %563 = vsyncpa [#allocation7], 1 }
 0x2d5   :  { %564 = vsyncpa [#allocation5], 1 }
 0x2d6   :  { %566 = vsyncpa [#allocation5 + $0x1], 1 }

</bundles_post_ra>
